<compile_context>
chip_gen: v6e
topology: v6e:2x2x1
jax: 0.10.0
libtpu: 0.0.40
codegen_flags: <defaults>
</compile_context>

<pallas_src>
import jax
import jax.numpy as jnp
from jax.experimental import pallas as pl
from jax.experimental.pallas import tpu as pltpu


def _round_up(x: int, m: int) -> int:
    return (x + m - 1) // m * m


def _twolayer_kernel(x_ref, w1_ref, w2_ref, o_ref):
    # hidden = relu(x_tile @ W1)   (MXU, f32 accumulation)
    h = jnp.dot(x_ref[...], w1_ref[...], preferred_element_type=jnp.float32)
    h = jnp.maximum(h, 0.0)  # clamp(min=0) in f32
    # y = hidden @ W2 — cast hidden back to the MXU compute dtype, keep f32 acc.
    y = jnp.dot(h.astype(w2_ref.dtype), w2_ref[...],
                preferred_element_type=jnp.float32)
    o_ref[...] = y.astype(o_ref.dtype)


def make_two_layer_params(w1, w2, compute_dtype=jnp.bfloat16):
    """Pre-transpose + zero-pad weights ONCE at parameter-load time.

    w1 : (H, D_in)   PyTorch Linear weight layout (out_features, in_features)
    w2 : (D_out, H)
    Returns W1^T padded to (D_in_p, H_p), W2^T padded to (H_p, D_out_p)
    in `compute_dtype`, plus the true D_out for slicing after the kernel.
    """
    H, D_in = w1.shape
    D_out, H2 = w2.shape
    assert H2 == H
    D_in_p = _round_up(D_in, 128)
    H_p = _round_up(H, 128)
    D_out_p = _round_up(D_out, 128)

    w1_t = jnp.zeros((D_in_p, H_p), compute_dtype)
    w1_t = w1_t.at[:D_in, :H].set(jnp.transpose(w1).astype(compute_dtype))
    w2_t = jnp.zeros((H_p, D_out_p), compute_dtype)
    w2_t = w2_t.at[:H, :D_out].set(jnp.transpose(w2).astype(compute_dtype))
    return w1_t, w2_t, D_out


def two_layer_nn(x, w1_t, w2_t, d_out, *, tile_m=512):
    """Forward pass: relu(x @ W1^T) @ W2^T with pre-transposed/padded weights."""
    N, D_in = x.shape
    D_in_p, H_p = w1_t.shape
    _, D_out_p = w2_t.shape
    compute_dtype = w1_t.dtype

    # N tile: multiple of 16 (safe for sub-32-bit sublane packing), large enough
    # to hide the ~0.35 us per-grid-step overhead; streamed & double-buffered.
    tm = min(tile_m, _round_up(N, 16))
    n_pad = _round_up(N, tm)

    # Zero-pad x: padded K columns multiply zero weight rows -> results unchanged.
    x_p = jnp.zeros((n_pad, D_in_p), compute_dtype)
    x_p = x_p.at[:N, :D_in].set(x.astype(compute_dtype))

    # VMEM budget: resident W1+W2 plus double-buffered x / out tiles.
    # Cap at 64 MiB so the plan also fits v7x (64 MiB VMEM per TensorCore).
    w_bytes = (w1_t.size + w2_t.size) * jnp.dtype(compute_dtype).itemsize
    stream_bytes = 2 * tm * (D_in_p * jnp.dtype(compute_dtype).itemsize
                             + D_out_p * jnp.dtype(x.dtype).itemsize)
    vmem_limit = int(min(max(2 * (w_bytes + stream_bytes), 16 * 2**20), 64 * 2**20))

    out_p = pl.pallas_call(
        _twolayer_kernel,
        out_shape=jax.ShapeDtypeStruct((n_pad, D_out_p), x.dtype),
        grid=(n_pad // tm,),
        in_specs=[
            pl.BlockSpec((tm, D_in_p), lambda i: (i, 0)),    # streamed x tiles
            pl.BlockSpec((D_in_p, H_p), lambda i: (0, 0)),   # W1 resident in VMEM
            pl.BlockSpec((H_p, D_out_p), lambda i: (0, 0)),  # W2 resident in VMEM
        ],
        out_specs=pl.BlockSpec((tm, D_out_p), lambda i: (i, 0)),
        compiler_params=pltpu.CompilerParams(
            dimension_semantics=("parallel",),   # megacore sharding on v7x
            vmem_limit_bytes=vmem_limit,
        ),
    )(x_p, w1_t, w2_t)

    return out_p[:N, :d_out]


if __name__ == "__main__":
    # Small shapes consistent with the module: N x D_in input, H hidden, D_out out.
    N, D_in, H, D_out = 8, 16, 32, 8

    key = jax.random.PRNGKey(0)
    kx, k1, k2 = jax.random.split(key, 3)

    x = jax.random.normal(kx, (N, D_in), dtype=jnp.float32)
    # PyTorch Linear weight layout: (out_features, in_features).
    w1 = jax.random.normal(k1, (H, D_in), dtype=jnp.float32) * 0.1
    w2 = jax.random.normal(k2, (D_out, H), dtype=jnp.float32) * 0.1

    # Reference (same math as the PyTorch forward).
    y_ref = jnp.maximum(x @ w1.T, 0.0) @ w2.T

    fwd = jax.jit(two_layer_nn, static_argnums=(3,))

    # f32 compute path: bit-faithful to the PyTorch semantics (tight tolerance).
    w1_f32, w2_f32, d_out = make_two_layer_params(w1, w2, compute_dtype=jnp.float32)
    y32 = fwd(x, w1_f32, w2_f32, d_out)
    jax.block_until_ready(y32)
    assert y32.shape == (N, D_out)
    assert jnp.allclose(y32, y_ref, atol=1e-5, rtol=1e-5)

    # bf16 compute path (recommended on v6e/v7x): f32 accumulation, loose tol.
    w1_bf, w2_bf, _ = make_two_layer_params(w1, w2, compute_dtype=jnp.bfloat16)
    y16 = fwd(x, w1_bf, w2_bf, d_out)
    jax.block_until_ready(y16)
    assert y16.shape == (N, D_out)
    assert jnp.allclose(y16, y_ref, atol=3e-2, rtol=3e-2)

    print("KERNEL_OK")
</pallas_src>

<mosaic_0001>
module attributes {stable_mosaic.version = 11 : i64} {
  func.func @_twolayer_kernel(%arg0: i32, %arg1: memref<16x128xf32, #tpu.memory_space<vmem>>, %arg2: memref<128x128xf32, #tpu.memory_space<vmem>>, %arg3: memref<128x128xf32, #tpu.memory_space<vmem>>, %arg4: memref<16x128xf32, #tpu.memory_space<vmem>>) attributes {dimension_semantics = [#tpu.dimension_semantics<parallel>], iteration_bounds = array<i64: 1>, scalar_prefetch = 0 : i64, scratch_operands = 0 : i64, tpu.core_type = #tpu.core_type<tc>, window_params = [{transform_indices = @transform_0, window_bounds = array<i64: 16, 128>}, {pipeline_mode = #tpu.pipeline_mode<synchronous>, transform_indices = @transform_1, window_bounds = array<i64: 128, 128>}, {pipeline_mode = #tpu.pipeline_mode<synchronous>, transform_indices = @transform_2, window_bounds = array<i64: 128, 128>}, {transform_indices = @transform_3, window_bounds = array<i64: 16, 128>}]} {
    %c0 = arith.constant 0 : index
    %c0_0 = arith.constant 0 : index
    %0 = vector.load %arg1[%c0, %c0_0] : memref<16x128xf32, #tpu.memory_space<vmem>>, vector<16x128xf32>
    %c0_1 = arith.constant 0 : index
    %c0_2 = arith.constant 0 : index
    %1 = vector.load %arg2[%c0_1, %c0_2] : memref<128x128xf32, #tpu.memory_space<vmem>>, vector<128x128xf32>
    %cst = arith.constant dense<0.000000e+00> : vector<16x128xf32>
    %2 = tpu.matmul %0, %1, %cst {dimension_numbers = #tpu.dot_dimension_numbers<[1], [0], [0], [1], [0, 0, 1, 1], [], []>} : vector<16x128xf32>, vector<128x128xf32>, vector<16x128xf32> -> vector<16x128xf32>
    %cst_3 = arith.constant 0.000000e+00 : f32
    %3 = vector.broadcast %cst_3 : f32 to vector<16x128xf32>
    %4 = arith.maximumf %2, %3 : vector<16x128xf32>
    %c0_4 = arith.constant 0 : index
    %c0_5 = arith.constant 0 : index
    %5 = vector.load %arg3[%c0_4, %c0_5] : memref<128x128xf32, #tpu.memory_space<vmem>>, vector<128x128xf32>
    %cst_6 = arith.constant dense<0.000000e+00> : vector<16x128xf32>
    %6 = tpu.matmul %4, %5, %cst_6 {dimension_numbers = #tpu.dot_dimension_numbers<[1], [0], [0], [1], [0, 0, 1, 1], [], []>} : vector<16x128xf32>, vector<128x128xf32>, vector<16x128xf32> -> vector<16x128xf32>
    %c0_7 = arith.constant 0 : index
    %c0_8 = arith.constant 0 : index
    %7 = vector.load %arg4[%c0_7, %c0_8] : memref<16x128xf32, #tpu.memory_space<vmem>>, vector<16x128xf32>
    tpu.vector_store %arg4[%c0_7, %c0_8], %6 {strides = array<i32>} : memref<16x128xf32, #tpu.memory_space<vmem>>, vector<16x128xf32>,
    return
  }
  func.func @transform_0(%arg0: i32) -> (i32, i32) {
    %c0_i32 = arith.constant 0 : i32
    %c0_i32_0 = arith.constant 0 : i32
    return %arg0, %c0_i32 : i32, i32
  }
  func.func @transform_1(%arg0: i32) -> (i32, i32) {
    %c0_i32 = arith.constant 0 : i32
    %c0_i32_0 = arith.constant 0 : i32
    %c0_i32_1 = arith.constant 0 : i32
    return %c0_i32, %c0_i32_0 : i32, i32
  }
  func.func @transform_2(%arg0: i32) -> (i32, i32) {
    %c0_i32 = arith.constant 0 : i32
    %c0_i32_0 = arith.constant 0 : i32
    %c0_i32_1 = arith.constant 0 : i32
    return %c0_i32, %c0_i32_0 : i32, i32
  }
  func.func @transform_3(%arg0: i32) -> (i32, i32) {
    %c0_i32 = arith.constant 0 : i32
    %c0_i32_0 = arith.constant 0 : i32
    return %arg0, %c0_i32 : i32, i32
  }
}

</mosaic_0001>

<bundles_post_ra>
// kernel: two_layer_nn.1
= control target key start
LH: loop header
LB: loop body
LE: loop exit
PB: predicated region body
PF: predicated region fallthrough
CT: control target
= control target key end

     0   :  { %8 = vsyncpa [#allocation3], 0  ;;  %s432_s0 = inlined_call_operand.vmem [shape: f32[16,128], index: 0, kind: input, shape index: {}]   ;;  %s433_s1 = inlined_call_operand.hbm [shape: f32[128,128], index: 1, kind: input, shape index: {}]   ;;  %s434_s2 = inlined_call_operand.hbm [shape: f32[128,128], index: 2, kind: input, shape index: {}]   ;;  %s435_s3 = inlined_call_operand.vmem [shape: f32[16,128], index: 3, kind: output, shape index: {}]  }
   0x1   :  { %9 = vsyncpa [#allocation5], 0  ;;  %s390_s12 = smov [#allocation2]  }
   0x2   :  { %s17_s13 = sshll.u32 %s390_s12, 4  ;;  %s18_s13 = int_to_ptr.vmem [resolvable:$true] %s17_s13 }
   0x3   :  { %s354_s14 = scalar_lea.vmem %s18_s13, 2048  ;;  %p359_p1 = scmp.lt.s32.totalorder %s18_s13, %s18_s13 }
   0x4   :  { %p355_p0 = scmp.ne.s32.totalorder %s18_s13, %s354_s14  ;;  %p360_p2 = scmp.lt.s32.totalorder %s354_s14, %s354_s14 }
   0x6   :  { %p361_p3 = por %p360_p2, %p359_p1 }
   0x8   :  { %p362_p4 = pnand %p361_p3, %p355_p0 }
   0xa   :  { %365 = shalt.err (!%p362_p4)
}
   0xb   :  { %s391_s15 = smov 128   ;;  %s392_s16 = smov 8  }
   0xc   :  { %23 = dma.hbm_to_vmem [thread:$0]  %s433_s1, 2048, %s18_s13, [#allocation3], %s391_s15, %s391_s15, %s392_s16  }
   0xd   :  { %s393_s19 = smov [#allocation4]  }
   0xe   :  { %s29_s20 = sshll.u32 %s393_s19, 4  ;;  %s30_s20 = int_to_ptr.vmem [resolvable:$true] %s29_s20 }
   0xf   :  { %s374_s21 = scalar_lea.vmem %s30_s20, 2048  ;;  %p379_p6 = scmp.lt.s32.totalorder %s30_s20, %s30_s20 }
  0x10   :  { %p375_p5 = scmp.ne.s32.totalorder %s30_s20, %s374_s21  ;;  %p380_p7 = scmp.lt.s32.totalorder %s374_s21, %s374_s21 }
  0x12   :  { %p381_p8 = por %p380_p7, %p379_p6 }
  0x14   :  { %p382_p9 = pnand %p381_p8, %p375_p5 }
  0x16   :  { %385 = shalt.err (!%p382_p9)
}
  0x17   :  { %35 = dma.hbm_to_vmem [thread:$0]  %s434_s2, 2048, %s30_s20, [#allocation5], %s391_s15, %s391_s15, %s392_s16  }
  0x18   :  { %386 = dma.done.wait [#allocation3], 2048  }
  0x19   :  { %387 = vsyncadd [#allocation3], 4294965248 }
  0x1a   :  { %388 = dma.done.wait [#allocation5], 2048  }
  0x1b   :  { %389 = vsyncadd [#allocation5], 4294965248  ;;  %v59_v0 = vld [vmem:[#allocation2 + $0x78] sm:$0xff]  ;;  %v58_v1 = vld [vmem:[#allocation2 + $0x70] sm:$0xff] }
  0x1c   :  { %272 = vmatprep.subr.mxu0 %v59_v0  ;;  %v57_v2 = vld [vmem:[#allocation2 + $0x68] sm:$0xff]  ;;  %v56_v3 = vld [vmem:[#allocation2 + $0x60] sm:$0xff]  ;;  %v55_v5 = vld [vmem:[#allocation2 + $0x58] sm:$0xff] }
  0x1d   :  { %273 = vmatpush3.msra.mxu0 %v59_v0  ;;  %v42_v4 = vld [vmem:[%s432_s0] sm:$0xff]  ;;  %v152_v6 = vld [vmem:[#allocation4 + $0x78] sm:$0xff]  ;;  %v151_v7 = vld [vmem:[#allocation4 + $0x70] sm:$0xff] }
  0x1e   :  { %274 = vmatprep.subr.mxu0 %v58_v1  ;;  %304 = vmatprep.mubr.f32.mxu0 %v42_v4  ;;  %v54_v8 = vld [vmem:[#allocation2 + $0x50] sm:$0xff]  ;;  %v150_v9 = vld [vmem:[#allocation4 + $0x68] sm:$0xff]  ;;  %v149_v11 = vld [vmem:[#allocation4 + $0x60] sm:$0xff] }
  0x1f   :  { %275 = vmatpush3.msra.mxu0 %v58_v1  ;;  %307 = vmatprep.subr.mxu1 %v152_v6  ;;  %v53_v10 = vld [vmem:[#allocation2 + $0x48] sm:$0xff]  ;;  %v52_v12 = vld [vmem:[#allocation2 + $0x40] sm:$0xff]  ;;  %v148_v13 = vld [vmem:[#allocation4 + $0x58] sm:$0xff] }
  0x20   :  { %276 = vmatprep.subr.mxu0 %v57_v2  ;;  %308 = vmatpush3.msra.mxu1 %v152_v6  ;;  %v51_v14 = vld [vmem:[#allocation2 + $0x38] sm:$0xff]  ;;  %v147_v15 = vld [vmem:[#allocation4 + $0x50] sm:$0xff]  ;;  %v146_v17 = vld [vmem:[#allocation4 + $0x48] sm:$0xff] }
  0x21   :  { %277 = vmatpush3.msra.mxu0 %v57_v2  ;;  %309 = vmatprep.subr.mxu1 %v151_v7  ;;  %v50_v16 = vld [vmem:[#allocation2 + $0x30] sm:$0xff]  ;;  %v49_v18 = vld [vmem:[#allocation2 + $0x28] sm:$0xff]  ;;  %v145_v19 = vld [vmem:[#allocation4 + $0x40] sm:$0xff] }
  0x22   :  { %278 = vmatprep.subr.mxu0 %v56_v3  ;;  %310 = vmatpush3.msra.mxu1 %v151_v7  ;;  %v48_v20 = vld [vmem:[#allocation2 + $0x20] sm:$0xff]  ;;  %v144_v21 = vld [vmem:[#allocation4 + $0x38] sm:$0xff]  ;;  %v143_v23 = vld [vmem:[#allocation4 + $0x30] sm:$0xff] }
  0x23   :  { %279 = vmatpush3.msra.mxu0 %v56_v3  ;;  %311 = vmatprep.subr.mxu1 %v150_v9  ;;  %v47_v22 = vld [vmem:[#allocation2 + $0x18] sm:$0xff]  ;;  %v46_v24 = vld [vmem:[#allocation2 + $0x10] sm:$0xff]  ;;  %v142_v25 = vld [vmem:[#allocation4 + $0x28] sm:$0xff] }
  0x24   :  { %280 = vmatprep.subr.mxu0 %v55_v5  ;;  %312 = vmatpush3.msra.mxu1 %v150_v9  ;;  %v45_v26 = vld [vmem:[#allocation2 + $0x8] sm:$0xff]  ;;  %v141_v27 = vld [vmem:[#allocation4 + $0x20] sm:$0xff]  ;;  %v140_v29 = vld [vmem:[#allocation4 + $0x18] sm:$0xff] }
  0x25   :  { %281 = vmatpush3.msra.mxu0 %v55_v5  ;;  %313 = vmatprep.subr.mxu1 %v149_v11  ;;  %v44_v28 = vld [vmem:[#allocation2] sm:$0xff]  ;;  %v43_v30 = vld [vmem:[%s432_s0 + $0x8] sm:$0xff]  ;;  %v139_v31 = vld [vmem:[#allocation4 + $0x10] sm:$0xff] }
  0x26   :  { %282 = vmatprep.subr.mxu0 %v54_v8  ;;  %314 = vmatpush3.msra.mxu1 %v149_v11  ;;  %v138_v32 = vld [vmem:[#allocation4 + $0x8] sm:$0xff]  ;;  %v137_v33 = vld [vmem:[#allocation4] sm:$0xff] }
  0x27   :  { %283 = vmatpush3.msra.mxu0 %v54_v8  ;;  %315 = vmatprep.subr.mxu1 %v148_v13 }
  0x28   :  { %284 = vmatprep.subr.mxu0 %v53_v10  ;;  %316 = vmatpush3.msra.mxu1 %v148_v13 }
  0x29   :  { %285 = vmatpush3.msra.mxu0 %v53_v10  ;;  %317 = vmatprep.subr.mxu1 %v147_v15 }
  0x2a   :  { %286 = vmatprep.subr.mxu0 %v52_v12  ;;  %318 = vmatpush3.msra.mxu1 %v147_v15 }
  0x2b   :  { %287 = vmatpush3.msra.mxu0 %v52_v12  ;;  %319 = vmatprep.subr.mxu1 %v146_v17 }
  0x2c   :  { %288 = vmatprep.subr.mxu0 %v51_v14  ;;  %320 = vmatpush3.msra.mxu1 %v146_v17 }
  0x2d   :  { %289 = vmatpush3.msra.mxu0 %v51_v14  ;;  %321 = vmatprep.subr.mxu1 %v145_v19 }
  0x2e   :  { %290 = vmatprep.subr.mxu0 %v50_v16  ;;  %322 = vmatpush3.msra.mxu1 %v145_v19 }
  0x2f   :  { %291 = vmatpush3.msra.mxu0 %v50_v16  ;;  %323 = vmatprep.subr.mxu1 %v144_v21 }
  0x30   :  { %292 = vmatprep.subr.mxu0 %v49_v18  ;;  %324 = vmatpush3.msra.mxu1 %v144_v21 }
  0x31   :  { %293 = vmatpush3.msra.mxu0 %v49_v18  ;;  %325 = vmatprep.subr.mxu1 %v143_v23 }
  0x32   :  { %294 = vmatprep.subr.mxu0 %v48_v20  ;;  %326 = vmatpush3.msra.mxu1 %v143_v23 }
  0x33   :  { %295 = vmatpush3.msra.mxu0 %v48_v20  ;;  %327 = vmatprep.subr.mxu1 %v142_v25 }
  0x34   :  { %296 = vmatprep.subr.mxu0 %v47_v22  ;;  %328 = vmatpush3.msra.mxu1 %v142_v25 }
  0x35   :  { %297 = vmatpush3.msra.mxu0 %v47_v22  ;;  %329 = vmatprep.subr.mxu1 %v141_v27 }
  0x36   :  { %298 = vmatprep.subr.mxu0 %v46_v24  ;;  %330 = vmatpush3.msra.mxu1 %v141_v27 }
  0x37   :  { %299 = vmatpush3.msra.mxu0 %v46_v24  ;;  %331 = vmatprep.subr.mxu1 %v140_v29 }
  0x38   :  { %300 = vmatprep.subr.mxu0 %v45_v26  ;;  %332 = vmatpush3.msra.mxu1 %v140_v29 }
  0x39   :  { %301 = vmatpush3.msra.mxu0 %v45_v26  ;;  %333 = vmatprep.subr.mxu1 %v139_v31 }
  0x3a   :  { %302 = vmatprep.subr.mxu0 %v44_v28  ;;  %334 = vmatpush3.msra.mxu1 %v139_v31 }
  0x3b   :  { %303 = vmatpush3.msra.mxu0 %v44_v28  ;;  %335 = vmatprep.subr.mxu1 %v138_v32 }
  0x3c   :  { %305 = vmatmul.mubr.f32.vlgmr.msra.gmra.mxu0 %v43_v30  ;;  %336 = vmatpush3.msra.mxu1 %v138_v32 }
  0x3d   :  { %337 = vmatprep.subr.mxu1 %v137_v33 }
  0x3e   :  { %338 = vmatpush3.msra.mxu1 %v137_v33 }
  0xfc   :  { %v306_v34 = vpop.f32.mrf.mxu0 }
  0xfd   :  { %v136_v37 = vmax.f32 %v306_v34, 0.0 }
  0xfe   :  { %v126_v35 = vpop.f32.mrf.mxu0 }
  0xff   :  { %v135_v36 = vmax.f32 %v126_v35, 0.0 }
 0x101   :  { %339 = vmatprep.mubr.f32.mxu1 %v135_v36 }
 0x102   :  { %340 = vmatmul.mubr.f32.vlgmr.msra.gmra.mxu1 %v136_v37 }
 0x1c2   :  { %v341_v38 = vpop.f32.mrf.mxu1 }
 0x1c3   :  { %229 = vst [vmem:[%s435_s3 + $0x8] sm:$0xff] %v341_v38 }
 0x1c4   :  { %v219_v39 = vpop.f32.mrf.mxu1 }
 0x1c5   :  { %228 = vst [vmem:[%s435_s3] sm:$0xff] %v219_v39 }
 0x1c6   :  { %234 = vsyncpa [#allocation3], 1 }
 0x1c7   :  { %235 = vsyncpa [#allocation5], 1 }

</bundles_post_ra>
